<compile_context>
chip_gen: v5e
topology: v5e:2x2
jax: 0.10.0
libtpu: 0.0.40
codegen_flags: <defaults>
</compile_context>

<pallas_src>
from functools import partial

import jax
import jax.numpy as jnp
from jax.experimental import pallas as pl
from jax.experimental.pallas import tpu as pltpu

_OUT_WIDTH = 128  # lane-dense output slab width (one full lane set)


# ---------------------------------------------------------------------------
# Fused Pallas kernel
# ---------------------------------------------------------------------------
def _softplus(x):
    # numerically stable softplus; written with exp/log (EUP ops) only.
    return jnp.maximum(x, 0.0) + jnp.log(1.0 + jnp.exp(-jnp.abs(x)))


def _disc_logsoftmax2(x, w1, b1, w2, b2):
    """Linear -> LeakyReLU(0.2) -> Linear(., 2) -> log_softmax(dim=1).

    Returns the two log-prob columns separately (each (n, 1)).  The 2-class
    log_softmax uses the closed form [-softplus(l1-l0), -softplus(l0-l1)].
    """
    h = jnp.dot(x, w1, preferred_element_type=jnp.float32) + b1
    h = jnp.where(h > 0.0, h, 0.2 * h)
    logits = jnp.dot(h, w2, preferred_element_type=jnp.float32) + b2  # (n, 2)
    d = logits[:, 1:2] - logits[:, 0:1]
    return -_softplus(d), -_softplus(-d)


def _fused_transnet_kernel(*refs, n, h_dim, ndim, n_gnn, out_width):
    x_ref, a_ref, wr_ref, br_ref = refs[:4]
    rest = refs[4:]
    gnn_refs = rest[: 2 * n_gnn]
    dw1, db1, dw2, db2 = rest[2 * n_gnn: 2 * n_gnn + 4]
    lw1, lb1, lw2, lb2 = rest[2 * n_gnn + 4: 2 * n_gnn + 8]
    o_ref = rest[2 * n_gnn + 8]

    x = x_ref[0]   # (n, dmax)  feature-padded node features of this graph
    a = a_ref[0]   # (n, n)     adjacency of this graph

    # dimRedu: Dropout(0.7) is identity in eval mode, then Linear.
    h_lin = jnp.dot(x, wr_ref[0], preferred_element_type=jnp.float32) + br_ref[0]

    # GCN stack: y = A @ (H @ W) + b (or the associativity-equivalent
    # (A @ H) @ W when dout > din so the n^2 matmul runs at the narrow width).
    h = h_lin
    for l in range(n_gnn):
        w = gnn_refs[2 * l][...]
        b = gnn_refs[2 * l + 1][...]
        din, dout = w.shape
        if dout > din:
            h = jnp.dot(jnp.dot(a, h, preferred_element_type=jnp.float32), w,
                        preferred_element_type=jnp.float32) + b
        else:
            h = jnp.dot(a, jnp.dot(h, w, preferred_element_type=jnp.float32),
                        preferred_element_type=jnp.float32) + b
        # ReLU between layers; on the final layer this folds the caller's outer
        # F.relu (relu is idempotent), matching the reference semantics.
        h = jnp.maximum(h, 0.0)
    h_relu = h     # (n, ndim)

    d0, d1 = _disc_logsoftmax2(h_relu, dw1[...], db1[...], dw2[...], db2[...])
    e0, e1 = _disc_logsoftmax2(h_lin, lw1[...], lb1[...], lw2[...], lb2[...])

    # Lane-dense output slab: [h_lin | h_relu | disc(2) | disc_linear(2) | 0s]
    c = 0
    o_ref[0, :, c:c + h_dim] = h_lin
    c += h_dim
    o_ref[0, :, c:c + ndim] = h_relu
    c += ndim
    o_ref[0, :, c:c + 1] = d0
    c += 1
    o_ref[0, :, c:c + 1] = d1
    c += 1
    o_ref[0, :, c:c + 1] = e0
    c += 1
    o_ref[0, :, c:c + 1] = e1
    c += 1
    o_ref[0, :, c:] = jnp.zeros((n, out_width - c), jnp.float32)


def fused_transnet_call(x_stack, a_stack, wr_stack, br_stack,
                        gnn_layers, disc, disc_lin, *, h_dim, ndim):
    G, n, dmax = x_stack.shape
    n_gnn = len(gnn_layers)

    shared = []
    for (w, b) in gnn_layers:
        shared += [w, b]
    shared += list(disc) + list(disc_lin)

    per_graph_specs = [
        pl.BlockSpec((1, n, dmax), lambda g: (g, 0, 0)),
        pl.BlockSpec((1, n, n), lambda g: (g, 0, 0)),
        pl.BlockSpec((1, dmax, h_dim), lambda g: (g, 0, 0)),
        pl.BlockSpec((1, 1, h_dim), lambda g: (g, 0, 0)),
    ]
    # Shared weights: constant index_map -> stay resident in VMEM across graphs.
    shared_specs = [pl.BlockSpec(arr.shape, lambda g: (0, 0)) for arr in shared]

    kernel = partial(_fused_transnet_kernel, n=n, h_dim=h_dim, ndim=ndim,
                     n_gnn=n_gnn, out_width=_OUT_WIDTH)

    return pl.pallas_call(
        kernel,
        out_shape=jax.ShapeDtypeStruct((G, n, _OUT_WIDTH), jnp.float32),
        grid=(G,),
        in_specs=per_graph_specs + shared_specs,
        out_specs=pl.BlockSpec((1, n, _OUT_WIDTH), lambda g: (g, 0, 0)),
        compiler_params=pltpu.CompilerParams(
            dimension_semantics=("parallel",)),  # shard graphs across TCs (v7x)
    )(x_stack, a_stack, wr_stack, br_stack, *shared)


# ---------------------------------------------------------------------------
# Parameter construction (deterministic, synthetic)
# ---------------------------------------------------------------------------
def _init_linear(key, din, dout, scale=0.1):
    kw, kb = jax.random.split(key)
    w = jax.random.normal(kw, (din, dout), jnp.float32) * scale
    b = jax.random.normal(kb, (1, dout), jnp.float32) * scale
    return w, b


def init_transnet_params(key, configs):
    h_dim = configs["feat_num"]
    ndim = configs["ndim"]
    hidden_layers = configs["hidden_layers"]
    input_dim = configs["input_dim"]

    keys = jax.random.split(key, 16)
    params = {}

    # dimRedu: one Linear per input_dim entry (Dropout(0.7) is identity in eval)
    params["dimredu"] = []
    for j, d_in in enumerate(input_dim):
        params["dimredu"].append(_init_linear(jax.random.fold_in(keys[0], j), d_in, h_dim))

    # shared GNN "hiddens": h_dim -> hidden_layers... -> ndim
    dims = [h_dim] + list(hidden_layers) + [ndim]
    params["gnn"] = []
    for l in range(len(dims) - 1):
        params["gnn"].append(_init_linear(jax.random.fold_in(keys[1], l), dims[l], dims[l + 1]))

    # domain_disc (shared across all sources, as in the torch ModuleList of one module)
    params["disc_w1"], params["disc_b1"] = _init_linear(keys[2], ndim, ndim)
    params["disc_w2"], params["disc_b2"] = _init_linear(keys[3], ndim, 2)

    # domain_disc_linear (shared across all sources)
    params["discl_w1"], params["discl_b1"] = _init_linear(keys[4], h_dim, h_dim)
    params["discl_w2"], params["discl_b2"] = _init_linear(keys[5], h_dim, 2)

    return params


# ---------------------------------------------------------------------------
# Forward pass (jitted; single fused pallas_call)
# ---------------------------------------------------------------------------
@jax.jit
def transnet_forward(params, sinputs, tinputs, sadj, tadj, rate):
    # `rate` only scales gradients in GradientReversalLayer.backward; fwd = identity.
    del rate
    num_sources = len(sinputs)
    h_dim = params["dimredu"][0][0].shape[1]
    ndim = params["gnn"][-1][0].shape[1]

    graphs = list(sinputs) + [tinputs]
    adjs = list(sadj) + [tadj]
    n = graphs[0].shape[0]
    dmax = max(x.shape[1] for x in graphs)

    def pad_feat(x):
        return jnp.pad(x, ((0, 0), (0, dmax - x.shape[1])))

    # Stack per-graph tensors (feature axis zero-padded to the max input dim;
    # the matching weight rows are zero-padded too, so results are identical).
    x_stack = jnp.stack([pad_feat(x) for x in graphs])                   # (G, n, dmax)
    a_stack = jnp.stack(adjs)                                            # (G, n, n)

    redu = [params["dimredu"][i] for i in range(num_sources)] + [params["dimredu"][-1]]
    wr_stack = jnp.stack(
        [jnp.pad(w, ((0, dmax - w.shape[0]), (0, 0))) for (w, _) in redu])  # (G, dmax, h_dim)
    br_stack = jnp.stack([b for (_, b) in redu])                            # (G, 1, h_dim)

    disc = (params["disc_w1"], params["disc_b1"], params["disc_w2"], params["disc_b2"])
    disc_lin = (params["discl_w1"], params["discl_b1"],
                params["discl_w2"], params["discl_b2"])

    out = fused_transnet_call(x_stack, a_stack, wr_stack, br_stack,
                              params["gnn"], disc, disc_lin,
                              h_dim=h_dim, ndim=ndim)                    # (G, n, 128)

    h_lin = out[:, :, :h_dim]
    h_relu = out[:, :, h_dim:h_dim + ndim]
    dom = out[:, :, h_dim + ndim:h_dim + ndim + 2]
    dom_lin = out[:, :, h_dim + ndim + 2:h_dim + ndim + 4]

    sh_linear = [h_lin[i] for i in range(num_sources)]
    th_linear = h_lin[num_sources]
    sh_relu = [h_relu[i] for i in range(num_sources)]
    th_relu = h_relu[num_sources]

    sdomains = [dom[i] for i in range(num_sources)]
    sdomains_linear = [dom_lin[i] for i in range(num_sources)]
    # Target-domain discriminator outputs are identical for every source
    # (shared weights, same th_relu / th_linear): compute once, replicate.
    tdom = dom[num_sources]
    tdom_lin = dom_lin[num_sources]
    tdomains = [tdom for _ in range(num_sources)]
    tdomains_linear = [tdom_lin for _ in range(num_sources)]

    return (sh_relu, th_relu, sh_linear, th_linear,
            sdomains, tdomains, sdomains_linear, tdomains_linear)


# ---------------------------------------------------------------------------
# Demo
# ---------------------------------------------------------------------------
if __name__ == "__main__":
    configs = {
        "num_sources": 2,
        "num_classes": [3, 3],
        "feat_num": 16,             # h_dim
        "hidden_layers": [32],
        "ndim": 8,
        "input_dim": [24, 20, 16],  # two source domains + one target domain
        "dropout": 0.5,
        "type": "gcn",
    }
    num_sources = configs["num_sources"]
    n_nodes = 8

    key = jax.random.PRNGKey(0)
    k_par, k_s, k_t, k_a = jax.random.split(key, 4)

    params = init_transnet_params(k_par, configs)

    sinputs = [
        jax.random.normal(jax.random.fold_in(k_s, i),
                          (n_nodes, configs["input_dim"][i]), jnp.float32)
        for i in range(num_sources)
    ]
    tinputs = jax.random.normal(k_t, (n_nodes, configs["input_dim"][-1]), jnp.float32)

    def make_adj(k):
        a = jax.random.uniform(k, (n_nodes, n_nodes), jnp.float32) * 0.1
        a = a + jnp.eye(n_nodes, dtype=jnp.float32)
        return a / jnp.sum(a, axis=1, keepdims=True)   # row-normalized adjacency

    sadj = [make_adj(jax.random.fold_in(k_a, i)) for i in range(num_sources)]
    tadj = make_adj(jax.random.fold_in(k_a, 99))

    out = transnet_forward(params, sinputs, tinputs, sadj, tadj, rate=0.5)

    for leaf in jax.tree_util.tree_leaves(out):
        jax.block_until_ready(leaf)

    print("KERNEL_OK")
</pallas_src>

<mosaic_0001>
module attributes {stable_mosaic.version = 11 : i64} {
  func.func @_fused_transnet_kernel(%arg0: i32, %arg1: memref<1x8x24xf32, #tpu.memory_space<vmem>>, %arg2: memref<1x8x8xf32, #tpu.memory_space<vmem>>, %arg3: memref<1x24x16xf32, #tpu.memory_space<vmem>>, %arg4: memref<1x1x16xf32, #tpu.memory_space<vmem>>, %arg5: memref<16x32xf32, #tpu.memory_space<vmem>>, %arg6: memref<1x32xf32, #tpu.memory_space<vmem>>, %arg7: memref<32x8xf32, #tpu.memory_space<vmem>>, %arg8: memref<1x8xf32, #tpu.memory_space<vmem>>, %arg9: memref<8x8xf32, #tpu.memory_space<vmem>>, %arg10: memref<1x8xf32, #tpu.memory_space<vmem>>, %arg11: memref<8x2xf32, #tpu.memory_space<vmem>>, %arg12: memref<1x2xf32, #tpu.memory_space<vmem>>, %arg13: memref<16x16xf32, #tpu.memory_space<vmem>>, %arg14: memref<1x16xf32, #tpu.memory_space<vmem>>, %arg15: memref<16x2xf32, #tpu.memory_space<vmem>>, %arg16: memref<1x2xf32, #tpu.memory_space<vmem>>, %arg17: memref<1x8x128xf32, #tpu.memory_space<vmem>>) attributes {dimension_semantics = [#tpu.dimension_semantics<parallel>], iteration_bounds = array<i64: 3>, scalar_prefetch = 0 : i64, scratch_operands = 0 : i64, tpu.core_type = #tpu.core_type<tc>, window_params = [{transform_indices = @transform_0, window_bounds = array<i64: 1, 8, 24>}, {transform_indices = @transform_1, window_bounds = array<i64: 1, 8, 8>}, {transform_indices = @transform_2, window_bounds = array<i64: 1, 24, 16>}, {transform_indices = @transform_3, window_bounds = array<i64: 1, 1, 16>}, {pipeline_mode = #tpu.pipeline_mode<synchronous>, transform_indices = @transform_4, window_bounds = array<i64: 16, 32>}, {pipeline_mode = #tpu.pipeline_mode<synchronous>, transform_indices = @transform_5, window_bounds = array<i64: 1, 32>}, {pipeline_mode = #tpu.pipeline_mode<synchronous>, transform_indices = @transform_6, window_bounds = array<i64: 32, 8>}, {pipeline_mode = #tpu.pipeline_mode<synchronous>, transform_indices = @transform_7, window_bounds = array<i64: 1, 8>}, {pipeline_mode = #tpu.pipeline_mode<synchronous>, transform_indices = @transform_8, window_bounds = array<i64: 8, 8>}, {pipeline_mode = #tpu.pipeline_mode<synchronous>, transform_indices = @transform_9, window_bounds = array<i64: 1, 8>}, {pipeline_mode = #tpu.pipeline_mode<synchronous>, transform_indices = @transform_10, window_bounds = array<i64: 8, 2>}, {pipeline_mode = #tpu.pipeline_mode<synchronous>, transform_indices = @transform_11, window_bounds = array<i64: 1, 2>}, {pipeline_mode = #tpu.pipeline_mode<synchronous>, transform_indices = @transform_12, window_bounds = array<i64: 16, 16>}, {pipeline_mode = #tpu.pipeline_mode<synchronous>, transform_indices = @transform_13, window_bounds = array<i64: 1, 16>}, {pipeline_mode = #tpu.pipeline_mode<synchronous>, transform_indices = @transform_14, window_bounds = array<i64: 16, 2>}, {pipeline_mode = #tpu.pipeline_mode<synchronous>, transform_indices = @transform_15, window_bounds = array<i64: 1, 2>}, {transform_indices = @transform_16, window_bounds = array<i64: 1, 8, 128>}]} {
    %c0 = arith.constant 0 : index
    %c0_0 = arith.constant 0 : index
    %c0_1 = arith.constant 0 : index
    %0 = vector.load %arg1[%c0, %c0_0, %c0_1] : memref<1x8x24xf32, #tpu.memory_space<vmem>>, vector<1x8x24xf32>
    %1 = vector.shape_cast %0 : vector<1x8x24xf32> to vector<8x24xf32>
    %c0_2 = arith.constant 0 : index
    %c0_3 = arith.constant 0 : index
    %c0_4 = arith.constant 0 : index
    %2 = vector.load %arg2[%c0_2, %c0_3, %c0_4] : memref<1x8x8xf32, #tpu.memory_space<vmem>>, vector<1x8x8xf32>
    %3 = vector.shape_cast %2 : vector<1x8x8xf32> to vector<8x8xf32>
    %c0_5 = arith.constant 0 : index
    %c0_6 = arith.constant 0 : index
    %c0_7 = arith.constant 0 : index
    %4 = vector.load %arg3[%c0_5, %c0_6, %c0_7] : memref<1x24x16xf32, #tpu.memory_space<vmem>>, vector<1x24x16xf32>
    %5 = vector.shape_cast %4 : vector<1x24x16xf32> to vector<24x16xf32>
    %cst = arith.constant dense<0.000000e+00> : vector<8x16xf32>
    %6 = tpu.matmul %1, %5, %cst {dimension_numbers = #tpu.dot_dimension_numbers<[1], [0], [0], [1], [0, 0, 1, 1], [], []>} : vector<8x24xf32>, vector<24x16xf32>, vector<8x16xf32> -> vector<8x16xf32>
    %c0_8 = arith.constant 0 : index
    %c0_9 = arith.constant 0 : index
    %c0_10 = arith.constant 0 : index
    %7 = vector.load %arg4[%c0_8, %c0_9, %c0_10] : memref<1x1x16xf32, #tpu.memory_space<vmem>>, vector<1x1x16xf32>
    %8 = vector.shape_cast %7 : vector<1x1x16xf32> to vector<1x16xf32>
    %9 = vector.broadcast %8 : vector<1x16xf32> to vector<8x16xf32>
    %10 = arith.addf %6, %9 : vector<8x16xf32>
    %c0_11 = arith.constant 0 : index
    %c0_12 = arith.constant 0 : index
    %11 = vector.load %arg5[%c0_11, %c0_12] : memref<16x32xf32, #tpu.memory_space<vmem>>, vector<16x32xf32>
    %c0_13 = arith.constant 0 : index
    %c0_14 = arith.constant 0 : index
    %12 = vector.load %arg6[%c0_13, %c0_14] : memref<1x32xf32, #tpu.memory_space<vmem>>, vector<1x32xf32>
    %cst_15 = arith.constant dense<0.000000e+00> : vector<8x16xf32>
    %13 = tpu.matmul %3, %10, %cst_15 {dimension_numbers = #tpu.dot_dimension_numbers<[1], [0], [0], [1], [0, 0, 1, 1], [], []>} : vector<8x8xf32>, vector<8x16xf32>, vector<8x16xf32> -> vector<8x16xf32>
    %cst_16 = arith.constant dense<0.000000e+00> : vector<8x32xf32>
    %14 = tpu.matmul %13, %11, %cst_16 {dimension_numbers = #tpu.dot_dimension_numbers<[1], [0], [0], [1], [0, 0, 1, 1], [], []>} : vector<8x16xf32>, vector<16x32xf32>, vector<8x32xf32> -> vector<8x32xf32>
    %15 = vector.broadcast %12 : vector<1x32xf32> to vector<8x32xf32>
    %16 = arith.addf %14, %15 : vector<8x32xf32>
    %cst_17 = arith.constant 0.000000e+00 : f32
    %17 = vector.broadcast %cst_17 : f32 to vector<8x32xf32>
    %18 = arith.maximumf %16, %17 : vector<8x32xf32>
    %c0_18 = arith.constant 0 : index
    %c0_19 = arith.constant 0 : index
    %19 = vector.load %arg7[%c0_18, %c0_19] : memref<32x8xf32, #tpu.memory_space<vmem>>, vector<32x8xf32>
    %c0_20 = arith.constant 0 : index
    %c0_21 = arith.constant 0 : index
    %20 = vector.load %arg8[%c0_20, %c0_21] : memref<1x8xf32, #tpu.memory_space<vmem>>, vector<1x8xf32>
    %cst_22 = arith.constant dense<0.000000e+00> : vector<8x8xf32>
    %21 = tpu.matmul %18, %19, %cst_22 {dimension_numbers = #tpu.dot_dimension_numbers<[1], [0], [0], [1], [0, 0, 1, 1], [], []>} : vector<8x32xf32>, vector<32x8xf32>, vector<8x8xf32> -> vector<8x8xf32>
    %cst_23 = arith.constant dense<0.000000e+00> : vector<8x8xf32>
    %22 = tpu.matmul %3, %21, %cst_23 {dimension_numbers = #tpu.dot_dimension_numbers<[1], [0], [0], [1], [0, 0, 1, 1], [], []>} : vector<8x8xf32>, vector<8x8xf32>, vector<8x8xf32> -> vector<8x8xf32>
    %23 = vector.broadcast %20 : vector<1x8xf32> to vector<8x8xf32>
    %24 = arith.addf %22, %23 : vector<8x8xf32>
    %cst_24 = arith.constant 0.000000e+00 : f32
    %25 = vector.broadcast %cst_24 : f32 to vector<8x8xf32>
    %26 = arith.maximumf %24, %25 : vector<8x8xf32>
    %c0_25 = arith.constant 0 : index
    %c0_26 = arith.constant 0 : index
    %27 = vector.load %arg9[%c0_25, %c0_26] : memref<8x8xf32, #tpu.memory_space<vmem>>, vector<8x8xf32>
    %c0_27 = arith.constant 0 : index
    %c0_28 = arith.constant 0 : index
    %28 = vector.load %arg10[%c0_27, %c0_28] : memref<1x8xf32, #tpu.memory_space<vmem>>, vector<1x8xf32>
    %c0_29 = arith.constant 0 : index
    %c0_30 = arith.constant 0 : index
    %29 = vector.load %arg11[%c0_29, %c0_30] : memref<8x2xf32, #tpu.memory_space<vmem>>, vector<8x2xf32>
    %c0_31 = arith.constant 0 : index
    %c0_32 = arith.constant 0 : index
    %30 = vector.load %arg12[%c0_31, %c0_32] : memref<1x2xf32, #tpu.memory_space<vmem>>, vector<1x2xf32>
    %cst_33 = arith.constant dense<0.000000e+00> : vector<8x8xf32>
    %31 = tpu.matmul %26, %27, %cst_33 {dimension_numbers = #tpu.dot_dimension_numbers<[1], [0], [0], [1], [0, 0, 1, 1], [], []>} : vector<8x8xf32>, vector<8x8xf32>, vector<8x8xf32> -> vector<8x8xf32>
    %32 = vector.broadcast %28 : vector<1x8xf32> to vector<8x8xf32>
    %33 = arith.addf %31, %32 : vector<8x8xf32>
    %cst_34 = arith.constant 0.000000e+00 : f32
    %34 = vector.broadcast %cst_34 : f32 to vector<8x8xf32>
    %35 = arith.cmpf ogt, %33, %34 : vector<8x8xf32>
    %cst_35 = arith.constant 2.000000e-01 : f32
    %36 = vector.broadcast %cst_35 : f32 to vector<8x8xf32>
    %37 = arith.mulf %36, %33 : vector<8x8xf32>
    %38 = arith.select %35, %33, %37 : vector<8x8xi1>, vector<8x8xf32>
    %cst_36 = arith.constant dense<0.000000e+00> : vector<8x2xf32>
    %39 = tpu.matmul %38, %29, %cst_36 {dimension_numbers = #tpu.dot_dimension_numbers<[1], [0], [0], [1], [0, 0, 1, 1], [], []>} : vector<8x8xf32>, vector<8x2xf32>, vector<8x2xf32> -> vector<8x2xf32>
    %40 = vector.broadcast %30 : vector<1x2xf32> to vector<8x2xf32>
    %41 = arith.addf %39, %40 : vector<8x2xf32>
    %42 = vector.extract_strided_slice %41 {offsets = [0, 1], sizes = [8, 1], strides = [1, 1]} : vector<8x2xf32> to vector<8x1xf32>
    %43 = vector.extract_strided_slice %41 {offsets = [0, 0], sizes = [8, 1], strides = [1, 1]} : vector<8x2xf32> to vector<8x1xf32>
    %44 = arith.subf %42, %43 : vector<8x1xf32>
    %cst_37 = arith.constant 0.000000e+00 : f32
    %45 = vector.broadcast %cst_37 : f32 to vector<8x1xf32>
    %46 = arith.maximumf %44, %45 : vector<8x1xf32>
    %47 = math.absf %44 : vector<8x1xf32>
    %cst_38 = arith.constant 0.000000e+00 : f32
    %48 = vector.broadcast %cst_38 : f32 to vector<8x1xf32>
    %49 = arith.subf %48, %47 : vector<8x1xf32>
    %50 = math.exp %49 : vector<8x1xf32>
    %cst_39 = arith.constant 1.000000e+00 : f32
    %51 = vector.broadcast %cst_39 : f32 to vector<8x1xf32>
    %52 = arith.addf %51, %50 : vector<8x1xf32>
    %53 = math.log %52 : vector<8x1xf32>
    %54 = arith.addf %46, %53 : vector<8x1xf32>
    %cst_40 = arith.constant 0.000000e+00 : f32
    %55 = vector.broadcast %cst_40 : f32 to vector<8x1xf32>
    %56 = arith.subf %55, %54 : vector<8x1xf32>
    %cst_41 = arith.constant 0.000000e+00 : f32
    %57 = vector.broadcast %cst_41 : f32 to vector<8x1xf32>
    %58 = arith.subf %57, %44 : vector<8x1xf32>
    %cst_42 = arith.constant 0.000000e+00 : f32
    %59 = vector.broadcast %cst_42 : f32 to vector<8x1xf32>
    %60 = arith.maximumf %58, %59 : vector<8x1xf32>
    %61 = math.absf %58 : vector<8x1xf32>
    %cst_43 = arith.constant 0.000000e+00 : f32
    %62 = vector.broadcast %cst_43 : f32 to vector<8x1xf32>
    %63 = arith.subf %62, %61 : vector<8x1xf32>
    %64 = math.exp %63 : vector<8x1xf32>
    %cst_44 = arith.constant 1.000000e+00 : f32
    %65 = vector.broadcast %cst_44 : f32 to vector<8x1xf32>
    %66 = arith.addf %65, %64 : vector<8x1xf32>
    %67 = math.log %66 : vector<8x1xf32>
    %68 = arith.addf %60, %67 : vector<8x1xf32>
    %cst_45 = arith.constant 0.000000e+00 : f32
    %69 = vector.broadcast %cst_45 : f32 to vector<8x1xf32>
    %70 = arith.subf %69, %68 : vector<8x1xf32>
    %c0_46 = arith.constant 0 : index
    %c0_47 = arith.constant 0 : index
    %71 = vector.load %arg13[%c0_46, %c0_47] : memref<16x16xf32, #tpu.memory_space<vmem>>, vector<16x16xf32>
    %c0_48 = arith.constant 0 : index
    %c0_49 = arith.constant 0 : index
    %72 = vector.load %arg14[%c0_48, %c0_49] : memref<1x16xf32, #tpu.memory_space<vmem>>, vector<1x16xf32>
    %c0_50 = arith.constant 0 : index
    %c0_51 = arith.constant 0 : index
    %73 = vector.load %arg15[%c0_50, %c0_51] : memref<16x2xf32, #tpu.memory_space<vmem>>, vector<16x2xf32>
    %c0_52 = arith.constant 0 : index
    %c0_53 = arith.constant 0 : index
    %74 = vector.load %arg16[%c0_52, %c0_53] : memref<1x2xf32, #tpu.memory_space<vmem>>, vector<1x2xf32>
    %cst_54 = arith.constant dense<0.000000e+00> : vector<8x16xf32>
    %75 = tpu.matmul %10, %71, %cst_54 {dimension_numbers = #tpu.dot_dimension_numbers<[1], [0], [0], [1], [0, 0, 1, 1], [], []>} : vector<8x16xf32>, vector<16x16xf32>, vector<8x16xf32> -> vector<8x16xf32>
    %76 = vector.broadcast %72 : vector<1x16xf32> to vector<8x16xf32>
    %77 = arith.addf %75, %76 : vector<8x16xf32>
    %cst_55 = arith.constant 0.000000e+00 : f32
    %78 = vector.broadcast %cst_55 : f32 to vector<8x16xf32>
    %79 = arith.cmpf ogt, %77, %78 : vector<8x16xf32>
    %cst_56 = arith.constant 2.000000e-01 : f32
    %80 = vector.broadcast %cst_56 : f32 to vector<8x16xf32>
    %81 = arith.mulf %80, %77 : vector<8x16xf32>
    %82 = arith.select %79, %77, %81 : vector<8x16xi1>, vector<8x16xf32>
    %cst_57 = arith.constant dense<0.000000e+00> : vector<8x2xf32>
    %83 = tpu.matmul %82, %73, %cst_57 {dimension_numbers = #tpu.dot_dimension_numbers<[1], [0], [0], [1], [0, 0, 1, 1], [], []>} : vector<8x16xf32>, vector<16x2xf32>, vector<8x2xf32> -> vector<8x2xf32>
    %84 = vector.broadcast %74 : vector<1x2xf32> to vector<8x2xf32>
    %85 = arith.addf %83, %84 : vector<8x2xf32>
    %86 = vector.extract_strided_slice %85 {offsets = [0, 1], sizes = [8, 1], strides = [1, 1]} : vector<8x2xf32> to vector<8x1xf32>
    %87 = vector.extract_strided_slice %85 {offsets = [0, 0], sizes = [8, 1], strides = [1, 1]} : vector<8x2xf32> to vector<8x1xf32>
    %88 = arith.subf %86, %87 : vector<8x1xf32>
    %cst_58 = arith.constant 0.000000e+00 : f32
    %89 = vector.broadcast %cst_58 : f32 to vector<8x1xf32>
    %90 = arith.maximumf %88, %89 : vector<8x1xf32>
    %91 = math.absf %88 : vector<8x1xf32>
    %cst_59 = arith.constant 0.000000e+00 : f32
    %92 = vector.broadcast %cst_59 : f32 to vector<8x1xf32>
    %93 = arith.subf %92, %91 : vector<8x1xf32>
    %94 = math.exp %93 : vector<8x1xf32>
    %cst_60 = arith.constant 1.000000e+00 : f32
    %95 = vector.broadcast %cst_60 : f32 to vector<8x1xf32>
    %96 = arith.addf %95, %94 : vector<8x1xf32>
    %97 = math.log %96 : vector<8x1xf32>
    %98 = arith.addf %90, %97 : vector<8x1xf32>
    %cst_61 = arith.constant 0.000000e+00 : f32
    %99 = vector.broadcast %cst_61 : f32 to vector<8x1xf32>
    %100 = arith.subf %99, %98 : vector<8x1xf32>
    %cst_62 = arith.constant 0.000000e+00 : f32
    %101 = vector.broadcast %cst_62 : f32 to vector<8x1xf32>
    %102 = arith.subf %101, %88 : vector<8x1xf32>
    %cst_63 = arith.constant 0.000000e+00 : f32
    %103 = vector.broadcast %cst_63 : f32 to vector<8x1xf32>
    %104 = arith.maximumf %102, %103 : vector<8x1xf32>
    %105 = math.absf %102 : vector<8x1xf32>
    %cst_64 = arith.constant 0.000000e+00 : f32
    %106 = vector.broadcast %cst_64 : f32 to vector<8x1xf32>
    %107 = arith.subf %106, %105 : vector<8x1xf32>
    %108 = math.exp %107 : vector<8x1xf32>
    %cst_65 = arith.constant 1.000000e+00 : f32
    %109 = vector.broadcast %cst_65 : f32 to vector<8x1xf32>
    %110 = arith.addf %109, %108 : vector<8x1xf32>
    %111 = math.log %110 : vector<8x1xf32>
    %112 = arith.addf %104, %111 : vector<8x1xf32>
    %cst_66 = arith.constant 0.000000e+00 : f32
    %113 = vector.broadcast %cst_66 : f32 to vector<8x1xf32>
    %114 = arith.subf %113, %112 : vector<8x1xf32>
    %c0_67 = arith.constant 0 : index
    %c0_68 = arith.constant 0 : index
    %c0_69 = arith.constant 0 : index
    %115 = vector.load %arg17[%c0_67, %c0_68, %c0_69] : memref<1x8x128xf32, #tpu.memory_space<vmem>>, vector<1x8x16xf32>
    %116 = vector.shape_cast %115 : vector<1x8x16xf32> to vector<8x16xf32>
    %117 = vector.shape_cast %10 : vector<8x16xf32> to vector<1x8x16xf32>
    tpu.vector_store %arg17[%c0_67, %c0_68, %c0_69], %117 {strides = array<i32>} : memref<1x8x128xf32, #tpu.memory_space<vmem>>, vector<1x8x16xf32>,
    %c0_70 = arith.constant 0 : index
    %c0_71 = arith.constant 0 : index
    %c16 = arith.constant 16 : index
    %118 = vector.load %arg17[%c0_70, %c0_71, %c16] : memref<1x8x128xf32, #tpu.memory_space<vmem>>, vector<1x8x8xf32>
    %119 = vector.shape_cast %118 : vector<1x8x8xf32> to vector<8x8xf32>
    %120 = vector.shape_cast %26 : vector<8x8xf32> to vector<1x8x8xf32>
    tpu.vector_store %arg17[%c0_70, %c0_71, %c16], %120 {strides = array<i32>} : memref<1x8x128xf32, #tpu.memory_space<vmem>>, vector<1x8x8xf32>,
    %c0_72 = arith.constant 0 : index
    %c0_73 = arith.constant 0 : index
    %c24 = arith.constant 24 : index
    %121 = vector.load %arg17[%c0_72, %c0_73, %c24] : memref<1x8x128xf32, #tpu.memory_space<vmem>>, vector<1x8x1xf32>
    %122 = vector.shape_cast %121 : vector<1x8x1xf32> to vector<8x1xf32>
    %123 = vector.shape_cast %56 : vector<8x1xf32> to vector<1x8x1xf32>
    tpu.vector_store %arg17[%c0_72, %c0_73, %c24], %123 {strides = array<i32>} : memref<1x8x128xf32, #tpu.memory_space<vmem>>, vector<1x8x1xf32>,
    %c0_74 = arith.constant 0 : index
    %c0_75 = arith.constant 0 : index
    %c25 = arith.constant 25 : index
    %124 = vector.load %arg17[%c0_74, %c0_75, %c25] : memref<1x8x128xf32, #tpu.memory_space<vmem>>, vector<1x8x1xf32>
    %125 = vector.shape_cast %124 : vector<1x8x1xf32> to vector<8x1xf32>
    %126 = vector.shape_cast %70 : vector<8x1xf32> to vector<1x8x1xf32>
    tpu.vector_store %arg17[%c0_74, %c0_75, %c25], %126 {strides = array<i32>} : memref<1x8x128xf32, #tpu.memory_space<vmem>>, vector<1x8x1xf32>,
    %c0_76 = arith.constant 0 : index
    %c0_77 = arith.constant 0 : index
    %c26 = arith.constant 26 : index
    %127 = vector.load %arg17[%c0_76, %c0_77, %c26] : memref<1x8x128xf32, #tpu.memory_space<vmem>>, vector<1x8x1xf32>
    %128 = vector.shape_cast %127 : vector<1x8x1xf32> to vector<8x1xf32>
    %129 = vector.shape_cast %100 : vector<8x1xf32> to vector<1x8x1xf32>
    tpu.vector_store %arg17[%c0_76, %c0_77, %c26], %129 {strides = array<i32>} : memref<1x8x128xf32, #tpu.memory_space<vmem>>, vector<1x8x1xf32>,
    %c0_78 = arith.constant 0 : index
    %c0_79 = arith.constant 0 : index
    %c27 = arith.constant 27 : index
    %130 = vector.load %arg17[%c0_78, %c0_79, %c27] : memref<1x8x128xf32, #tpu.memory_space<vmem>>, vector<1x8x1xf32>
    %131 = vector.shape_cast %130 : vector<1x8x1xf32> to vector<8x1xf32>
    %132 = vector.shape_cast %114 : vector<8x1xf32> to vector<1x8x1xf32>
    tpu.vector_store %arg17[%c0_78, %c0_79, %c27], %132 {strides = array<i32>} : memref<1x8x128xf32, #tpu.memory_space<vmem>>, vector<1x8x1xf32>,
    %cst_80 = arith.constant 0.000000e+00 : f32
    %133 = vector.broadcast %cst_80 : f32 to vector<8x100xf32>
    %c0_81 = arith.constant 0 : index
    %c0_82 = arith.constant 0 : index
    %c28 = arith.constant 28 : index
    %134 = vector.load %arg17[%c0_81, %c0_82, %c28] : memref<1x8x128xf32, #tpu.memory_space<vmem>>, vector<1x8x100xf32>
    %135 = vector.shape_cast %134 : vector<1x8x100xf32> to vector<8x100xf32>
    %136 = vector.shape_cast %133 : vector<8x100xf32> to vector<1x8x100xf32>
    tpu.vector_store %arg17[%c0_81, %c0_82, %c28], %136 {strides = array<i32>} : memref<1x8x128xf32, #tpu.memory_space<vmem>>, vector<1x8x100xf32>,
    return
  }
  func.func @transform_0(%arg0: i32) -> (i32, i32, i32) {
    %c0_i32 = arith.constant 0 : i32
    %c0_i32_0 = arith.constant 0 : i32
    %c0_i32_1 = arith.constant 0 : i32
    return %arg0, %c0_i32, %c0_i32_0 : i32, i32, i32
  }
  func.func @transform_1(%arg0: i32) -> (i32, i32, i32) {
    %c0_i32 = arith.constant 0 : i32
    %c0_i32_0 = arith.constant 0 : i32
    %c0_i32_1 = arith.constant 0 : i32
    return %arg0, %c0_i32, %c0_i32_0 : i32, i32, i32
  }
  func.func @transform_2(%arg0: i32) -> (i32, i32, i32) {
    %c0_i32 = arith.constant 0 : i32
    %c0_i32_0 = arith.constant 0 : i32
    %c0_i32_1 = arith.constant 0 : i32
    return %arg0, %c0_i32, %c0_i32_0 : i32, i32, i32
  }
  func.func @transform_3(%arg0: i32) -> (i32, i32, i32) {
    %c0_i32 = arith.constant 0 : i32
    %c0_i32_0 = arith.constant 0 : i32
    %c0_i32_1 = arith.constant 0 : i32
    return %arg0, %c0_i32, %c0_i32_0 : i32, i32, i32
  }
  func.func @transform_4(%arg0: i32) -> (i32, i32) {
    %c0_i32 = arith.constant 0 : i32
    %c0_i32_0 = arith.constant 0 : i32
    %c0_i32_1 = arith.constant 0 : i32
    return %c0_i32, %c0_i32_0 : i32, i32
  }
  func.func @transform_5(%arg0: i32) -> (i32, i32) {
    %c0_i32 = arith.constant 0 : i32
    %c0_i32_0 = arith.constant 0 : i32
    %c0_i32_1 = arith.constant 0 : i32
    return %c0_i32, %c0_i32_0 : i32, i32
  }
  func.func @transform_6(%arg0: i32) -> (i32, i32) {
    %c0_i32 = arith.constant 0 : i32
    %c0_i32_0 = arith.constant 0 : i32
    %c0_i32_1 = arith.constant 0 : i32
    return %c0_i32, %c0_i32_0 : i32, i32
  }
  func.func @transform_7(%arg0: i32) -> (i32, i32) {
    %c0_i32 = arith.constant 0 : i32
    %c0_i32_0 = arith.constant 0 : i32
    %c0_i32_1 = arith.constant 0 : i32
    return %c0_i32, %c0_i32_0 : i32, i32
  }
  func.func @transform_8(%arg0: i32) -> (i32, i32) {
    %c0_i32 = arith.constant 0 : i32
    %c0_i32_0 = arith.constant 0 : i32
    %c0_i32_1 = arith.constant 0 : i32
    return %c0_i32, %c0_i32_0 : i32, i32
  }
  func.func @transform_9(%arg0: i32) -> (i32, i32) {
    %c0_i32 = arith.constant 0 : i32
    %c0_i32_0 = arith.constant 0 : i32
    %c0_i32_1 = arith.constant 0 : i32
    return %c0_i32, %c0_i32_0 : i32, i32
  }
  func.func @transform_10(%arg0: i32) -> (i32, i32) {
    %c0_i32 = arith.constant 0 : i32
    %c0_i32_0 = arith.constant 0 : i32
    %c0_i32_1 = arith.constant 0 : i32
    return %c0_i32, %c0_i32_0 : i32, i32
  }
  func.func @transform_11(%arg0: i32) -> (i32, i32) {
    %c0_i32 = arith.constant 0 : i32
    %c0_i32_0 = arith.constant 0 : i32
    %c0_i32_1 = arith.constant 0 : i32
    return %c0_i32, %c0_i32_0 : i32, i32
  }
  func.func @transform_12(%arg0: i32) -> (i32, i32) {
    %c0_i32 = arith.constant 0 : i32
    %c0_i32_0 = arith.constant 0 : i32
    %c0_i32_1 = arith.constant 0 : i32
    return %c0_i32, %c0_i32_0 : i32, i32
  }
  func.func @transform_13(%arg0: i32) -> (i32, i32) {
    %c0_i32 = arith.constant 0 : i32
    %c0_i32_0 = arith.constant 0 : i32
    %c0_i32_1 = arith.constant 0 : i32
    return %c0_i32, %c0_i32_0 : i32, i32
  }
  func.func @transform_14(%arg0: i32) -> (i32, i32) {
    %c0_i32 = arith.constant 0 : i32
    %c0_i32_0 = arith.constant 0 : i32
    %c0_i32_1 = arith.constant 0 : i32
    return %c0_i32, %c0_i32_0 : i32, i32
  }
  func.func @transform_15(%arg0: i32) -> (i32, i32) {
    %c0_i32 = arith.constant 0 : i32
    %c0_i32_0 = arith.constant 0 : i32
    %c0_i32_1 = arith.constant 0 : i32
    return %c0_i32, %c0_i32_0 : i32, i32
  }
  func.func @transform_16(%arg0: i32) -> (i32, i32, i32) {
    %c0_i32 = arith.constant 0 : i32
    %c0_i32_0 = arith.constant 0 : i32
    %c0_i32_1 = arith.constant 0 : i32
    return %arg0, %c0_i32, %c0_i32_0 : i32, i32, i32
  }
}

</mosaic_0001>

<bundles_post_ra>
// kernel: transnet_forward.1
= control target key start
LH: loop header
LB: loop body
LE: loop exit
PB: predicated region body
PF: predicated region fallthrough
CT: control target
= control target key end

     0   :  { %s1158_s21 = smov 0   ;;  %s1255_s0 = inlined_call_operand.vmem [shape: f32[3,8,24], index: 0, kind: input, shape index: {}]   ;;  %s1256_s1 = inlined_call_operand.vmem [shape: f32[3,8,8], index: 1, kind: input, shape index: {}]   ;;  %s1257_s2 = inlined_call_operand.vmem [shape: f32[3,24,16], index: 2, kind: input, shape index: {}]   ;;  %s1258_s3 = inlined_call_operand.vmem [shape: f32[3,1,16], index: 3, kind: input, shape index: {}]   ;;  %s1259_s4 = inlined_call_operand.vmem [shape: f32[16,32], index: 4, kind: input, shape index: {}]   ;;  %s1260_s5 = inlined_call_operand.vmem [shape: f32[1,32], index: 5, kind: input, shape index: {}]   ;;  %s1261_s6 = inlined_call_operand.vmem [shape: f32[32,8], index: 6, kind: input, shape index: {}]   ;;  %s1262_s7 = inlined_call_operand.vmem [shape: f32[1,8], index: 7, kind: input, shape index: {}]   ;;  %s1263_s8 = inlined_call_operand.vmem [shape: f32[8,8], index: 8, kind: input, shape index: {}]   ;;  %s1264_s9 = inlined_call_operand.vmem [shape: f32[1,8], index: 9, kind: input, shape index: {}]   ;;  %s1265_s10 = inlined_call_operand.vmem [shape: f32[8,2], index: 10, kind: input, shape index: {}]   ;;  %s1266_s11 = inlined_call_operand.vmem [shape: f32[1,2], index: 11, kind: input, shape index: {}]   ;;  %s1267_s12 = inlined_call_operand.vmem [shape: f32[16,16], index: 12, kind: input, shape index: {}]   ;;  %s1268_s13 = inlined_call_operand.vmem [shape: f32[1,16], index: 13, kind: input, shape index: {}]   ;;  %s1269_s14 = inlined_call_operand.vmem [shape: f32[16,2], index: 14, kind: input, shape index: {}]   ;;  %s1270_s15 = inlined_call_operand.vmem [shape: f32[1,2], index: 15, kind: input, shape index: {}]   ;;  %s1271_s16 = inlined_call_operand.vmem [shape: f32[3,8,128], index: 16, kind: output, shape index: {}]  }
   0x1   :  { %1272 = sst [smem:[#allocation2_spill]] %s1255_s0 }
   0x2 LB: > { %s999_s22 = sadd.s32 4294967295, %s1064_s21   ;;  %p1003_p0 = scmp.ge.s32.totalorder %s1064_s21, 1  ;;  %s1064_s21 = sphi %s1158_s21, %s26_s21  }
   0x3   : > { %p488_p1 = scmp.lt.s32.totalorder %s1064_s21, 4 }
   0x5   : > { %p489_p2 = pnand %p1003_p0, %p488_p1 }
   0x6   : > { %p548_p3 = scmp.lt.s32.totalorder (!%p489_p2), %s999_s22, 2  ;;  %s1273_s30 = sld [smem:[#allocation2_spill]] (!%p489_p2) }
   0x7   : > { %492 = sbr.rel (%p489_p2) target bundleno = 1213 (0x4bd), region = 84  ;;  %s1067_s25 = smov (!%p489_p2), 1  }
   0x8   : > { %s1069_s29 = smov (!%p489_p2), 24  }
   0xc   : > { %s1275_s22 = smov (!%p548_p3, %s999_s22), 2  ;;  %vm577_vm0 = vcmask 195584   ;;  %v602_v4 = vld [vmem:[%s1259_s4 + $0x8] sm:$0xff]  ;;  %vm631_vm1 = vcmask 130048   ;;  %vm604_vm2 = vcmask 64512   ;;  %v601_v9 = vld [vmem:[%s1259_s4] sm:$0xff] }
   0xd   : > { %s1019_s23 = smul.u32 24, %s1275_s22  ;;  %s1004_s24 = sshll.u32 %s1275_s22, 3  ;;  %649 = vmatpush.msra.mxu2 %v602_v4  ;;  %v659_v10 = vld [vmem:[%s1261_s6 + $0x18] sm:$0xff]  ;;  %v658_v12 = vld [vmem:[%s1261_s6 + $0x10] sm:$0xff]  ;;  %v657_v13 = vld [vmem:[%s1261_s6 + $0x8] sm:$0xff]  ;;  %vm661_vm3 = vcmask 261120  }
   0xe   : > { %s551_s0 = scalar_lea.vmem %s1273_s30, %s1004_s24  ;;  %s563_s19 = scalar_lea.vmem %s1258_s3, %s1275_s22  ;;  %677 = vmatpush.msra.mxu3 %v659_v10  ;;  %v656_v14 = vld [vmem:[%s1261_s6] sm:$0xff]  ;;  %v795_v15 = vld [vmem:[%s1267_s12 + $0x8] sm:$0xff]  ;;  %vm885_vm5 = vcmask 195712   ;;  %vm891_vm7 = vcmask 203968   ;;  %vm897_vm8 = vcmask 212168   ;;  %vm903_vm9 = vcmask 220368  }
   0xf   : > { %s560_s27 = scalar_lea.vmem %s1257_s2, %s1019_s23  ;;  %v568_v3 = vld [vmem:[%s551_s0] sm:$0xff]  ;;  %s555_s28 = scalar_lea.vmem %s1256_s1, %s1004_s24  ;;  %650 = vmatpush.msra.mxu2 %v601_v9  ;;  %v798_v22 = vld [vmem:[%s1269_s14 + $0x8] sm:$0xff]  ;;  %vm909_vm10 = vcmask 228568   ;;  %vm911_vm11 = vcmask 1047776  }
  0x10   : > { %v572_v0 = vld [vmem:[%s560_s27 + $0x10] sm:$0xff]  ;;  %v571_v1 = vld [vmem:[%s560_s27 + $0x8] sm:$0xff]  ;;  %v570_v2 = vld [vmem:[%s560_s27] sm:$0xff]  ;;  %s1184_s22 = scalar_lea.vmem %s1271_s16, %s1004_s24  ;;  %678 = vmatpush.msra.mxu3 %v658_v12  ;;  %s1066_s27 = smov 16  }
  0x11   : > { %594 = vmatpush.msra.mxu0 %v572_v0  ;;  %v1035_v5 = vld [vmem:[%s563_s19] ss:$0 sm:$0xff]  ;;  %s1070_s30 = smov 26  }
  0x12   : > { %v569_v8 = vld [vmem:[%s555_s28] sm:$0xff]  ;;  %679 = vmatpush.msra.mxu3 %v657_v13  ;;  %s1068_s28 = smov 23  }
  0x13   : > { %595 = vmatpush.msra.mxu0 %v571_v1  ;;  %v794_v16 = vld [vmem:[%s1267_s12] sm:$0xff] }
  0x14   : > { %680 = vmatpush.msra.mxu3 %v656_v14  ;;  %v1036_v17 = vld [vmem:[%s1260_s5] ss:$0 sm:$0xff] }
  0x15   : > { %596 = vmatpush.msra.mxu0 %v570_v2  ;;  %v797_v23 = vld [vmem:[%s1269_s14] sm:$0xff] }
  0x16   : > { %1008 = vmatmul.msk.f32.vlgmr.msra.gmra.mxu0 %vm577_vm0, %v568_v3  ;;  %820 = vmatpush.msrb.mxu3 %v795_v15  ;;  %v1037_v24 = vld [vmem:[%s1268_s13] ss:$0 sm:$0xff] }
  0x17   : > { %v709_v29 = vld [vmem:[%s1263_s8] sm:$0xff] }
  0x18   : > { %821 = vmatpush.msrb.mxu3 %v794_v16  ;;  %734 = vmatpush.msrb.mxu2 %v709_v29  ;;  %v1038_v30 = vld [vmem:[%s1262_s7] ss:$0 sm:$0xff] }
  0x19   : > { %v711_v34 = vld [vmem:[%s1265_s10] sm:$0xff] }
  0x1a   : > { %763 = vmatpush.msrb.mxu0 %v711_v34  ;;  %v1040_v36 = vld [vmem:[%s1264_s9] ss:$0 sm:$0xff] }
  0x1b   : > { %v1041_v41 = vld [vmem:[%s1266_s11] ss:$0 sm:$0xff] }
  0x1c   : > { %v1039_v44 = vld [vmem:[%s1270_s15] ss:$0 sm:$0xff] }
  0x93   : > { %v598_v6 = vpop.f32.mrf.mxu0 }
  0x94   : > { %v599_v7 = vadd.f32 %v1035_v5, %v598_v6 }
  0x96   : > { %623 = vmatpush.msra.mxu1 %v599_v7  ;;  %881 = vst.msk [vmem:[%s1184_s22] sm:$0xff] %vm631_vm1, %v599_v7 }
  0x97   : > { %1009 = vmatmul.msk.f32.vlgmr.msra.gmra.mxu1 %vm604_vm2, %v569_v8 }
 0x114   : > { %v625_v11 = vpop.f32.mrf.mxu1 }
 0x115   : > { %1010 = vmatmul.msk.f32.vlgmr.msra.gmra.mxu2 %vm631_vm1, %v625_v11 }
 0x198   : > { %v652_v18 = vpop.f32.mrf.mxu2 }
 0x199   : > { %v653_v19 = vadd.f32 %v1036_v17, %v652_v18 }
 0x19b   : > { %v655_v20 = vmax.f32 %v653_v19, 0.0 }
 0x19d   : > { %1011 = vmatmul.msk.f32.vlgmr.msra.gmra.mxu3 %vm661_vm3, %v655_v20 }
 0x1a5   : > { %1015 = vmatmul.msk.f32.vlgmr.msrb.gmra.mxu3 %vm631_vm1, %v599_v7 }
 0x220   : > { %v682_v21 = vpop.f32.mrf.mxu3 }
 0x221   : > { %703 = vmatpush.msrb.mxu1 %v682_v21 }
 0x222   : > { %1012 = vmatmul.msk.f32.vlgmr.msrb.gmra.mxu1 %vm604_vm2, %v569_v8 }
 0x223   : > { %849 = vmatpush.msra.mxu1 %v798_v22 }
 0x225   : > { %850 = vmatpush.msra.mxu1 %v797_v23 }
 0x228   : > { %v823_v25 = vpop.f32.mrf.mxu3 }
 0x229   : > { %v824_v26 = vadd.f32 %v1037_v24, %v823_v25 }
 0x22b   : > { %vm826_vm4 = vcmp.gt.f32.partialorder %v824_v26, 0.0  ;;  %v827_v27 = vmul.f32 0.2, %v824_v26 }
 0x22d   : > { %v828_v28 = vsel %vm826_vm4, %v824_v26, %v827_v27 }
 0x22e   : > { %1016 = vmatmul.msk.f32.vlgmr.msra.gmra.mxu1 %vm631_vm1, %v828_v28 }
 0x29f   : > { %v705_v31 = vpop.f32.mrf.mxu1 }
 0x2a0   : > { %v706_v32 = vadd.f32 %v1038_v30, %v705_v31 }
 0x2a2   : > { %v708_v33 = vmax.f32 %v706_v32, 0.0 }
 0x2a4   : > { %1013 = vmatmul.msk.f32.vlgmr.msrb.gmra.mxu2 %vm604_vm2, %v708_v33  ;;  %882 = vrot.lane.b32.xlu1 %v708_v33, %s1066_s27  ;;  %s1071_s27 = smov 25   ;;  %v1072_v33 = vmov 0.0  }
 0x2ab   : > { %v852_v45 = vpop.f32.mrf.mxu1 }
 0x2ac   : > { %v853_v46 = vadd.f32 %v1039_v44, %v852_v45 }
 0x316   : > { %v883_v35 = vpop.permute.xlu1 %882 }
 0x317   : > { %886 = vst.msk [vmem:[%s1184_s22] sm:$0xff] %vm885_vm5, %v883_v35 }
 0x327   : > { %v736_v37 = vpop.f32.mrf.mxu2 }
 0x328   : > { %v737_v38 = vadd.f32 %v1040_v36, %v736_v37 }
 0x32a   : > { %vm739_vm6 = vcmp.gt.f32.partialorder %v737_v38, 0.0  ;;  %v740_v39 = vmul.f32 0.2, %v737_v38 }
 0x32c   : > { %v741_v40 = vsel %vm739_vm6, %v737_v38, %v740_v39 }
 0x32d   : > { %1014 = vmatmul.msk.f32.vlgmr.msrb.gmra.mxu0 %vm604_vm2, %v741_v40 }
 0x3aa   : > { %v765_v42 = vpop.f32.mrf.mxu0 }
 0x3ab   : > { %v766_v43 = vadd.f32 %v1041_v41, %v765_v42 }
 0x3ad   : > { %769 = vrot.lane.b32.xlu0 %v766_v43, %s1067_s25 }
 0x3b5   : > { %856 = vrot.lane.b32.xlu0 %v853_v46, %s1067_s25 }
 0x41f   : > { %v770_v47 = vpop.permute.xlu0 %769 }
 0x420   : > { %v772_v48 = vsub.f32 %v766_v43, %v770_v47 }
 0x422   : > { %v774_v49 = vand.u32 2147483647, %v772_v48  ;;  %v783_v50 = vsub.f32 0.0, %v772_v48  ;;  %v773_v9 = vmax.f32 %v772_v48, 0.0 }
 0x424   : > { %v775_v51 = vsub.f32 0.0, %v774_v49  ;;  %v785_v52 = vand.u32 2147483647, %v783_v50  ;;  %v784_v14 = vmax.f32 %v783_v50, 0.0 }
 0x426   : > { %v776_v53 = vmul.f32 1.442695, %v775_v51  ;;  %v786_v54 = vsub.f32 0.0, %v785_v52 }
 0x427   : > { %v857_v55 = vpop.permute.xlu0 %856 }
 0x428   : > { %1042 = vpow2.f32 %v776_v53  ;;  %v787_v56 = vmul.f32 1.442695, %v786_v54  ;;  %v859_v57 = vsub.f32 %v853_v46, %v857_v55 }
 0x42a   : > { %v861_v58 = vand.u32 2147483647, %v859_v57  ;;  %v870_v59 = vsub.f32 0.0, %v859_v57  ;;  %1044 = vpow2.f32 %v787_v56  ;;  %v860_v20 = vmax.f32 %v859_v57, 0.0 }
 0x42c   : > { %v862_v60 = vsub.f32 0.0, %v861_v58  ;;  %v872_v61 = vand.u32 2147483647, %v870_v59  ;;  %v871_v23 = vmax.f32 %v870_v59, 0.0 }
 0x42e   : > { %v1043_v62 = vpop.eup %1042  ;;  %v863_v63 = vmul.f32 1.442695, %v862_v60  ;;  %v873_v0 = vsub.f32 0.0, %v872_v61 }
 0x42f   : > { %v778_v1 = vadd.f32 1.0, %v1043_v62 }
 0x430   : > { %v1045_v2 = vpop.eup %1044  ;;  %1046 = vpow2.f32 %v863_v63  ;;  %v874_v3 = vmul.f32 1.442695, %v873_v0 }
 0x431   : > { %1048 = vlog2.f32 %v778_v1  ;;  %v789_v4 = vadd.f32 1.0, %v1045_v2 }
 0x432   : > { %1050 = vpow2.f32 %v874_v3 }
 0x433   : > { %1052 = vlog2.f32 %v789_v4 }
 0x436   : > { %v1047_v5 = vpop.eup %1046 }
 0x437   : > { %v1049_v6 = vpop.eup %1048  ;;  %v865_v7 = vadd.f32 1.0, %v1047_v5 }
 0x438   : > { %v1051_v8 = vpop.eup %1050  ;;  %v780_v10 = vmul.f32 0.6931472, %v1049_v6 }
 0x439   : > { %v1053_v11 = vpop.eup %1052  ;;  %v876_v12 = vadd.f32 1.0, %v1051_v8  ;;  %1054 = vlog2.f32 %v865_v7 }
 0x43a   : > { %v781_v13 = vadd.f32 %v780_v10, %v773_v9  ;;  %v791_v15 = vmul.f32 0.6931472, %v1053_v11 }
 0x43b   : > { %1056 = vlog2.f32 %v876_v12 }
 0x43c   : > { %v782_v16 = vsub.f32 0.0, %v781_v13  ;;  %v792_v17 = vadd.f32 %v791_v15, %v784_v14 }
 0x43e   : > { %888 = vrot.lane.b32.xlu1 %v782_v16, %s1068_s28  ;;  %v793_v18 = vsub.f32 0.0, %v792_v17 }
 0x43f   : > { %v1055_v19 = vpop.eup %1054 }
 0x440   : > { %894 = vrot.lane.b32.xlu2 %v793_v18, %s1069_s29  ;;  %v867_v21 = vmul.f32 0.6931472, %v1055_v19 }
 0x441   : > { %v1057_v22 = vpop.eup %1056 }
 0x442   : > { %v878_v24 = vmul.f32 0.6931472, %v1057_v22  ;;  %v868_v25 = vadd.f32 %v867_v21, %v860_v20 }
 0x444   : > { %v879_v26 = vadd.f32 %v878_v24, %v871_v23  ;;  %v869_v28 = vsub.f32 0.0, %v868_v25 }
 0x446   : > { %v880_v27 = vsub.f32 0.0, %v879_v26 }
 0x448   : > { %906 = vrot.lane.b32.xlu0 %v880_v27, %s1070_s30  ;;  %900 = vrot.lane.b32.xlu2 %v869_v28, %s1071_s27 }
 0x49a   : > { %v895_v29 = vpop.permute.xlu2 %894 }
 0x4a2   : > { %v901_v31 = vpop.permute.xlu2 %900 }
 0x4b0   : > { %v889_v30 = vpop.permute.xlu1 %888 }
 0x4b1   : > { %892 = vst.msk [vmem:[%s1184_s22] sm:$0xff] %vm891_vm7, %v889_v30 }
 0x4b2   : > { %898 = vst.msk [vmem:[%s1184_s22] sm:$0xff] %vm897_vm8, %v895_v29 }
 0x4b3   : > { %904 = vst.msk [vmem:[%s1184_s22] sm:$0xff] %vm903_vm9, %v901_v31 }
 0x4ba   : > { %v907_v32 = vpop.permute.xlu0 %906 }
 0x4bb   : > { %910 = vst.msk [vmem:[%s1184_s22] sm:$0xff] %vm909_vm10, %v907_v32 }
 0x4bc   : > { %912 = vst.msk [vmem:[%s1184_s22] sm:$0xff] %vm911_vm11, %v1072_v33 }
 0x4bd PF: > { %s26_s21 = sadd.s32 1, %s1064_s21  }
 0x4be   : > { %p23_p4 = scmp.ge.s32.totalorder %s26_s21, 5  }
 0x4c0   :  { %25 = sbr.rel (!%p23_p4) target bundleno = 2 (0x2), region = 123 }

</bundles_post_ra>
